<compile_context>
chip_gen: v7x
topology: tpu7x:2x2x1
jax: 0.10.0
libtpu: 0.0.40
codegen_flags: <defaults>
</compile_context>

<pallas_src>
import jax
import jax.numpy as jnp
from jax.experimental import pallas as pl
from jax.experimental.pallas import tpu as pltpu


# ---------------------------------------------------------------------------
# Kernel
# ---------------------------------------------------------------------------
def q_critic_kernel(s_ref, a_ref,
                    w1s_ref, w1a_ref,
                    w2_ref, w3_ref,
                    bias_ref,
                    q_ref):
    cdt = w1s_ref.dtype  # compute dtype for the MXU (bf16)

    s = s_ref[...].astype(cdt)
    a = a_ref[...].astype(cdt)

    # Static (zero-cost) slices of the packed bias slab; adds stay in f32.
    b1 = bias_ref[0:1, :]
    b2 = bias_ref[1:2, :]
    b3 = bias_ref[2:3, 0:2]

    # Fused layer 1 for both heads; the [state|action] concat is folded into
    # two dots on the row-split weight.
    h = (jnp.dot(s, w1s_ref[...], preferred_element_type=jnp.float32)
         + jnp.dot(a, w1a_ref[...], preferred_element_type=jnp.float32)
         + b1)
    h = jnp.maximum(h, 0.0)

    # Fused (block-diagonal) layer 2: no cross-head mixing by construction.
    h = jnp.dot(h.astype(cdt), w2_ref[...],
                preferred_element_type=jnp.float32) + b2
    h = jnp.maximum(h, 0.0)

    # Fused output projection: lane 0 = q1, lane 1 = q2.
    q_ref[...] = jnp.dot(h.astype(cdt), w3_ref[...],
                         preferred_element_type=jnp.float32) + b3


# ---------------------------------------------------------------------------
# Parameter construction / packing
# ---------------------------------------------------------------------------
def init_q_critic_params(key, state_dim, action_dim, net_width):
    """Deterministic synthetic params. Weights are (in, out); biases (1, out)."""
    in_dim = state_dim + action_dim
    shapes = [
        (in_dim, net_width), (net_width,),      # l1
        (net_width, net_width), (net_width,),   # l2
        (net_width, 1), (1,),                   # l3
        (in_dim, net_width), (net_width,),      # l4
        (net_width, net_width), (net_width,),   # l5
        (net_width, 1), (1,),                   # l6
    ]
    keys = jax.random.split(key, len(shapes))
    params = []
    for k, s in zip(keys, shapes):
        fan_in = s[0] if len(s) == 2 else 1
        scale = 1.0 / jnp.sqrt(jnp.float32(max(fan_in, 1)))
        p = jax.random.uniform(k, s, jnp.float32, minval=-1.0, maxval=1.0) * scale
        if len(s) == 1:
            p = p.reshape(1, -1)
        params.append(p)
    return params


def pack_q_critic_params(params, state_dim, *, compute_dtype=jnp.bfloat16):
    """Fuse the twin heads + zero-pad hidden width into a lane-dense layout."""
    w1, b1, w2, b2, w3, b3, w4, b4, w5, b5, w6, b6 = params
    in_dim, nw = w1.shape
    head_pad = ((nw + 63) // 64) * 64      # per-head lane padding
    hp = 2 * head_pad                      # fused hidden width (multiple of 128)

    # Layer 1 (both heads side by side in the lane dimension).
    w1f = jnp.zeros((in_dim, hp), jnp.float32)
    w1f = w1f.at[:, :nw].set(w1).at[:, head_pad:head_pad + nw].set(w4)

    # Layer 2: block-diagonal so the heads never mix.
    w2f = jnp.zeros((hp, hp), jnp.float32)
    w2f = (w2f.at[:nw, :nw].set(w2)
              .at[head_pad:head_pad + nw, head_pad:head_pad + nw].set(w5))

    # Layer 3: one (hp, 2) projection, lane 0 -> q1, lane 1 -> q2.
    w3f = jnp.zeros((hp, 2), jnp.float32)
    w3f = w3f.at[:nw, 0:1].set(w3).at[head_pad:head_pad + nw, 1:2].set(w6)

    # All biases packed into one f32 slab: row0=b1|b4, row1=b2|b5, row2=[b3,b6].
    biasf = jnp.zeros((3, hp), jnp.float32)
    biasf = (biasf.at[0, :nw].set(b1[0]).at[0, head_pad:head_pad + nw].set(b4[0])
                  .at[1, :nw].set(b2[0]).at[1, head_pad:head_pad + nw].set(b5[0])
                  .at[2, 0].set(b3[0, 0]).at[2, 1].set(b6[0, 0]))

    # Row-split layer 1 so the state/action concat happens inside the matmul.
    return dict(
        w1s=w1f[:state_dim].astype(compute_dtype),
        w1a=w1f[state_dim:].astype(compute_dtype),
        w2=w2f.astype(compute_dtype),
        w3=w3f.astype(compute_dtype),
        bias=biasf,
    )


# ---------------------------------------------------------------------------
# Wrapper
# ---------------------------------------------------------------------------
def q_critic_forward(state, action, packed, *, tile_b=2048):
    B, ds = state.shape
    da = action.shape[1]

    tile_b = min(tile_b, B)
    grid = (pl.cdiv(B, tile_b),)

    def tiled(shape):
        return pl.BlockSpec(shape, lambda i: (i, 0))

    def resident(arr):
        return pl.BlockSpec(arr.shape, lambda i: (0, 0))

    q = pl.pallas_call(
        q_critic_kernel,
        out_shape=jax.ShapeDtypeStruct((B, 2), jnp.float32),
        grid=grid,
        in_specs=[
            tiled((tile_b, ds)),
            tiled((tile_b, da)),
            resident(packed["w1s"]),
            resident(packed["w1a"]),
            resident(packed["w2"]),
            resident(packed["w3"]),
            resident(packed["bias"]),
        ],
        out_specs=tiled((tile_b, 2)),
        compiler_params=pltpu.CompilerParams(
            dimension_semantics=("parallel",),
            vmem_limit_bytes=32 * 1024 * 1024,
        ),
    )(state, action,
      packed["w1s"], packed["w1a"],
      packed["w2"], packed["w3"],
      packed["bias"])

    return q[:, 0:1], q[:, 1:2]


# ---------------------------------------------------------------------------
# References
# ---------------------------------------------------------------------------
def q_critic_reference_f32(state, action, params):
    """Pure-f32 reference matching the PyTorch module's semantics."""
    sa = jnp.concatenate([state, action], axis=1).astype(jnp.float32)
    w1, b1, w2, b2, w3, b3, w4, b4, w5, b5, w6, b6 = params
    h = jnp.maximum(sa @ w1 + b1, 0.0)
    h = jnp.maximum(h @ w2 + b2, 0.0)
    q1 = h @ w3 + b3
    g = jnp.maximum(sa @ w4 + b4, 0.0)
    g = jnp.maximum(g @ w5 + b5, 0.0)
    q2 = g @ w6 + b6
    return q1, q2


def q_critic_reference_bf16(state, action, params):
    """Reference that mirrors the kernel's bf16-MXU / f32-accumulate numerics."""
    dt = jnp.bfloat16
    sa = jnp.concatenate([state, action], axis=1).astype(dt)
    w1, b1, w2, b2, w3, b3, w4, b4, w5, b5, w6, b6 = params

    def head(wa, ba, wb, bb, wc, bc):
        h = jnp.dot(sa, wa.astype(dt), preferred_element_type=jnp.float32) + ba
        h = jnp.maximum(h, 0.0)
        h = jnp.dot(h.astype(dt), wb.astype(dt),
                    preferred_element_type=jnp.float32) + bb
        h = jnp.maximum(h, 0.0)
        return jnp.dot(h.astype(dt), wc.astype(dt),
                       preferred_element_type=jnp.float32) + bc

    return head(w1, b1, w2, b2, w3, b3), head(w4, b4, w5, b5, w6, b6)


# ---------------------------------------------------------------------------
# Test
# ---------------------------------------------------------------------------
if __name__ == "__main__":
    state_dim, action_dim, net_width = 12, 4, 32
    batch = 4

    key = jax.random.PRNGKey(0)
    k_params, k_state, k_action = jax.random.split(key, 3)

    params = init_q_critic_params(k_params, state_dim, action_dim, net_width)
    packed = pack_q_critic_params(params, state_dim)

    state = jax.random.normal(k_state, (batch, state_dim), jnp.float32)
    action = jax.random.normal(k_action, (batch, action_dim), jnp.float32)

    q1, q2 = q_critic_forward(state, action, packed)
    q1 = jax.block_until_ready(q1)
    q2 = jax.block_until_ready(q2)
    assert q1.shape == (batch, 1) and q2.shape == (batch, 1)

    # Tight check vs. a reference with identical bf16/f32 rounding.
    q1_bf, q2_bf = q_critic_reference_bf16(state, action, params)
    assert jnp.allclose(q1, q1_bf, atol=1e-3, rtol=1e-3)
    assert jnp.allclose(q2, q2_bf, atol=1e-3, rtol=1e-3)

    # Loose check vs. the pure-f32 (PyTorch-semantics) reference.
    q1_f32, q2_f32 = q_critic_reference_f32(state, action, params)
    assert jnp.allclose(q1, q1_f32, atol=3e-2, rtol=3e-2)
    assert jnp.allclose(q2, q2_f32, atol=3e-2, rtol=3e-2)

    # Exercise the multi-tile batch grid ("parallel" axis, resident weights).
    big = 2048
    kb_s, kb_a = jax.random.split(jax.random.PRNGKey(1))
    state_b = jax.random.normal(kb_s, (big, state_dim), jnp.float32)
    action_b = jax.random.normal(kb_a, (big, action_dim), jnp.float32)
    q1b, q2b = q_critic_forward(state_b, action_b, packed, tile_b=512)
    q1b = jax.block_until_ready(q1b)
    q2b = jax.block_until_ready(q2b)
    q1b_ref, q2b_ref = q_critic_reference_bf16(state_b, action_b, params)
    assert jnp.allclose(q1b, q1b_ref, atol=1e-3, rtol=1e-3)
    assert jnp.allclose(q2b, q2b_ref, atol=1e-3, rtol=1e-3)

    print("KERNEL_OK")
</pallas_src>

<mosaic_0001>
module attributes {stable_mosaic.version = 11 : i64} {
  func.func @q_critic_kernel(%arg0: i32, %arg1: memref<4x12xf32, #tpu.memory_space<vmem>>, %arg2: memref<4x4xf32, #tpu.memory_space<vmem>>, %arg3: memref<12x128xbf16, #tpu.memory_space<vmem>>, %arg4: memref<4x128xbf16, #tpu.memory_space<vmem>>, %arg5: memref<128x128xbf16, #tpu.memory_space<vmem>>, %arg6: memref<128x2xbf16, #tpu.memory_space<vmem>>, %arg7: memref<3x128xf32, #tpu.memory_space<vmem>>, %arg8: memref<4x2xf32, #tpu.memory_space<vmem>>) attributes {dimension_semantics = [#tpu.dimension_semantics<parallel>], iteration_bounds = array<i64: 1>, scalar_prefetch = 0 : i64, scratch_operands = 0 : i64, tpu.core_type = #tpu.core_type<tc>, window_params = [{transform_indices = @transform_0, window_bounds = array<i64: 4, 12>}, {transform_indices = @transform_1, window_bounds = array<i64: 4, 4>}, {pipeline_mode = #tpu.pipeline_mode<synchronous>, transform_indices = @transform_2, window_bounds = array<i64: 12, 128>}, {pipeline_mode = #tpu.pipeline_mode<synchronous>, transform_indices = @transform_3, window_bounds = array<i64: 4, 128>}, {pipeline_mode = #tpu.pipeline_mode<synchronous>, transform_indices = @transform_4, window_bounds = array<i64: 128, 128>}, {pipeline_mode = #tpu.pipeline_mode<synchronous>, transform_indices = @transform_5, window_bounds = array<i64: 128, 2>}, {pipeline_mode = #tpu.pipeline_mode<synchronous>, transform_indices = @transform_6, window_bounds = array<i64: 3, 128>}, {transform_indices = @transform_7, window_bounds = array<i64: 4, 2>}]} {
    %c0 = arith.constant 0 : index
    %c0_0 = arith.constant 0 : index
    %0 = vector.load %arg1[%c0, %c0_0] : memref<4x12xf32, #tpu.memory_space<vmem>>, vector<4x12xf32>
    %1 = arith.truncf %0 : vector<4x12xf32> to vector<4x12xbf16>
    %c0_1 = arith.constant 0 : index
    %c0_2 = arith.constant 0 : index
    %2 = vector.load %arg2[%c0_1, %c0_2] : memref<4x4xf32, #tpu.memory_space<vmem>>, vector<4x4xf32>
    %3 = arith.truncf %2 : vector<4x4xf32> to vector<4x4xbf16>
    %c0_3 = arith.constant 0 : index
    %c0_4 = arith.constant 0 : index
    %4 = vector.load %arg7[%c0_3, %c0_4] : memref<3x128xf32, #tpu.memory_space<vmem>>, vector<1x128xf32>
    %c1 = arith.constant 1 : index
    %c0_5 = arith.constant 0 : index
    %5 = vector.load %arg7[%c1, %c0_5] : memref<3x128xf32, #tpu.memory_space<vmem>>, vector<1x128xf32>
    %c2 = arith.constant 2 : index
    %c0_6 = arith.constant 0 : index
    %6 = vector.load %arg7[%c2, %c0_6] : memref<3x128xf32, #tpu.memory_space<vmem>>, vector<1x2xf32>
    %c0_7 = arith.constant 0 : index
    %c0_8 = arith.constant 0 : index
    %7 = vector.load %arg3[%c0_7, %c0_8] : memref<12x128xbf16, #tpu.memory_space<vmem>>, vector<12x128xbf16>
    %cst = arith.constant dense<0.000000e+00> : vector<4x128xf32>
    %8 = tpu.matmul %1, %7, %cst {dimension_numbers = #tpu.dot_dimension_numbers<[1], [0], [0], [1], [0, 0, 1, 1], [], []>} : vector<4x12xbf16>, vector<12x128xbf16>, vector<4x128xf32> -> vector<4x128xf32>
    %c0_9 = arith.constant 0 : index
    %c0_10 = arith.constant 0 : index
    %9 = vector.load %arg4[%c0_9, %c0_10] : memref<4x128xbf16, #tpu.memory_space<vmem>>, vector<4x128xbf16>
    %cst_11 = arith.constant dense<0.000000e+00> : vector<4x128xf32>
    %10 = tpu.matmul %3, %9, %cst_11 {dimension_numbers = #tpu.dot_dimension_numbers<[1], [0], [0], [1], [0, 0, 1, 1], [], []>} : vector<4x4xbf16>, vector<4x128xbf16>, vector<4x128xf32> -> vector<4x128xf32>
    %11 = arith.addf %8, %10 : vector<4x128xf32>
    %12 = vector.broadcast %4 : vector<1x128xf32> to vector<4x128xf32>
    %13 = arith.addf %11, %12 : vector<4x128xf32>
    %cst_12 = arith.constant 0.000000e+00 : f32
    %14 = vector.broadcast %cst_12 : f32 to vector<4x128xf32>
    %15 = arith.maximumf %13, %14 : vector<4x128xf32>
    %16 = arith.truncf %15 : vector<4x128xf32> to vector<4x128xbf16>
    %c0_13 = arith.constant 0 : index
    %c0_14 = arith.constant 0 : index
    %17 = vector.load %arg5[%c0_13, %c0_14] : memref<128x128xbf16, #tpu.memory_space<vmem>>, vector<128x128xbf16>
    %cst_15 = arith.constant dense<0.000000e+00> : vector<4x128xf32>
    %18 = tpu.matmul %16, %17, %cst_15 {dimension_numbers = #tpu.dot_dimension_numbers<[1], [0], [0], [1], [0, 0, 1, 1], [], []>} : vector<4x128xbf16>, vector<128x128xbf16>, vector<4x128xf32> -> vector<4x128xf32>
    %19 = vector.broadcast %5 : vector<1x128xf32> to vector<4x128xf32>
    %20 = arith.addf %18, %19 : vector<4x128xf32>
    %cst_16 = arith.constant 0.000000e+00 : f32
    %21 = vector.broadcast %cst_16 : f32 to vector<4x128xf32>
    %22 = arith.maximumf %20, %21 : vector<4x128xf32>
    %23 = arith.truncf %22 : vector<4x128xf32> to vector<4x128xbf16>
    %c0_17 = arith.constant 0 : index
    %c0_18 = arith.constant 0 : index
    %24 = vector.load %arg6[%c0_17, %c0_18] : memref<128x2xbf16, #tpu.memory_space<vmem>>, vector<128x2xbf16>
    %cst_19 = arith.constant dense<0.000000e+00> : vector<4x2xf32>
    %25 = tpu.matmul %23, %24, %cst_19 {dimension_numbers = #tpu.dot_dimension_numbers<[1], [0], [0], [1], [0, 0, 1, 1], [], []>} : vector<4x128xbf16>, vector<128x2xbf16>, vector<4x2xf32> -> vector<4x2xf32>
    %26 = vector.broadcast %6 : vector<1x2xf32> to vector<4x2xf32>
    %27 = arith.addf %25, %26 : vector<4x2xf32>
    %c0_20 = arith.constant 0 : index
    %c0_21 = arith.constant 0 : index
    %28 = vector.load %arg8[%c0_20, %c0_21] : memref<4x2xf32, #tpu.memory_space<vmem>>, vector<4x2xf32>
    tpu.vector_store %arg8[%c0_20, %c0_21], %27 {strides = array<i32>} : memref<4x2xf32, #tpu.memory_space<vmem>>, vector<4x2xf32>,
    return
  }
  func.func @transform_0(%arg0: i32) -> (i32, i32) {
    %c0_i32 = arith.constant 0 : i32
    %c0_i32_0 = arith.constant 0 : i32
    return %arg0, %c0_i32 : i32, i32
  }
  func.func @transform_1(%arg0: i32) -> (i32, i32) {
    %c0_i32 = arith.constant 0 : i32
    %c0_i32_0 = arith.constant 0 : i32
    return %arg0, %c0_i32 : i32, i32
  }
  func.func @transform_2(%arg0: i32) -> (i32, i32) {
    %c0_i32 = arith.constant 0 : i32
    %c0_i32_0 = arith.constant 0 : i32
    %c0_i32_1 = arith.constant 0 : i32
    return %c0_i32, %c0_i32_0 : i32, i32
  }
  func.func @transform_3(%arg0: i32) -> (i32, i32) {
    %c0_i32 = arith.constant 0 : i32
    %c0_i32_0 = arith.constant 0 : i32
    %c0_i32_1 = arith.constant 0 : i32
    return %c0_i32, %c0_i32_0 : i32, i32
  }
  func.func @transform_4(%arg0: i32) -> (i32, i32) {
    %c0_i32 = arith.constant 0 : i32
    %c0_i32_0 = arith.constant 0 : i32
    %c0_i32_1 = arith.constant 0 : i32
    return %c0_i32, %c0_i32_0 : i32, i32
  }
  func.func @transform_5(%arg0: i32) -> (i32, i32) {
    %c0_i32 = arith.constant 0 : i32
    %c0_i32_0 = arith.constant 0 : i32
    %c0_i32_1 = arith.constant 0 : i32
    return %c0_i32, %c0_i32_0 : i32, i32
  }
  func.func @transform_6(%arg0: i32) -> (i32, i32) {
    %c0_i32 = arith.constant 0 : i32
    %c0_i32_0 = arith.constant 0 : i32
    %c0_i32_1 = arith.constant 0 : i32
    return %c0_i32, %c0_i32_0 : i32, i32
  }
  func.func @transform_7(%arg0: i32) -> (i32, i32) {
    %c0_i32 = arith.constant 0 : i32
    %c0_i32_0 = arith.constant 0 : i32
    return %arg0, %c0_i32 : i32, i32
  }
}

</mosaic_0001>

<bundles_post_ra>
// kernel: tpu_custom_call.1
= control target key start
LH: loop header
LB: loop body
LE: loop exit
PB: predicated region body
PF: predicated region fallthrough
CT: control target
= control target key end

     0   :  { %12 = vsyncpa [#allocation3], 0  ;;  %s522_s24 = smov [#allocation2]   ;;  %s672_s0 = inlined_call_operand.vmem [shape: f32[4,12], index: 0, kind: input, shape index: {}]   ;;  %s673_s1 = inlined_call_operand.vmem [shape: f32[4,4], index: 1, kind: input, shape index: {}]   ;;  %s674_s2 = inlined_call_operand.vmem [shape: bf16[12,128], index: 2, kind: input, shape index: {}]   ;;  %s675_s3 = inlined_call_operand.hbm [shape: bf16[4,128], index: 3, kind: input, shape index: {}]   ;;  %s676_s4 = inlined_call_operand.vmem [shape: bf16[128,128], index: 4, kind: input, shape index: {}]   ;;  %s677_s5 = inlined_call_operand.vmem [shape: bf16[128,2], index: 5, kind: input, shape index: {}]   ;;  %s678_s6 = inlined_call_operand.vmem [shape: f32[3,128], index: 6, kind: input, shape index: {}]   ;;  %s679_s7 = inlined_call_operand.vmem [shape: f32[4,2], index: 7, kind: output, shape index: {}]  }
   0x1   :  { %s25_s25 = sshll.u32 %s522_s24, 4  ;;  %s498_s28 = scalar_lea.hbm %s675_s3, 32  ;;  %s26_s25 = int_to_ptr.vmem [resolvable:$true] %s25_s25 }
   0x2   :  { %p499_p0 = scmp.ne.s32.totalorder %s675_s3, %s498_s28  ;;  %p502_p1 = scmp.lt.u32.totalorder %s498_s28, %s675_s3 }
   0x4   :  { %p504_p2 = pnand %p502_p1, %p499_p0 }
   0x6   :  { %507 = shalt.err (!%p504_p2)
}
   0x7   :  { %s508_s10 = scalar_lea.vmem %s26_s25, 32  ;;  %p513_p4 = scmp.lt.s32.totalorder %s26_s25, %s26_s25 }
   0x8   :  { %p509_p3 = scmp.ne.s32.totalorder %s26_s25, %s508_s10  ;;  %p514_p5 = scmp.lt.s32.totalorder %s508_s10, %s508_s10 }
   0xa   :  { %p515_p6 = por %p514_p5, %p513_p4 }
   0xc   :  { %p516_p7 = pnand %p515_p6, %p509_p3 }
   0xe   :  { %519 = shalt.err (!%p516_p7)
}
   0xf   :  { %28 = dma.hbm_to_vmem [thread:$0]  %s675_s3, 32, %s26_s25, [#allocation3]  }
  0x10   :  { %520 = dma.done.wait [#allocation3], 32  }
  0x11   :  { %521 = vsyncadd [#allocation3], 4294967264  ;;  %v523_v0 = vmov 0.0   ;;  %vm524_vm0 = vmmov 0   ;;  %vm53_vm1 = vcmask 1041408   ;;  %vm106_vm2 = vcmask 1045504  }
  0x12   :  { %426 = vmatprep.subr.bf16.mxu0 %v523_v0  ;;  %432 = vmatprep.subr.bf16.mxu1 %v523_v0  ;;  %vm49_vm3 = vcmask 31744   ;;  %v48_v1 = vld [vmem:[#allocation2] sm:$0x3]  ;;  %vm102_vm4 = vcmask 97280   ;;  %v483_v10 = vld [vmem:[%s676_s4 + $0x8] sm:$0xff]   ;;  %v484_v11 = vld [vmem:[%s676_s4 + $0x10] sm:$0xff]  }
  0x13   :  { %428 = vmatprep.mubr.msk.bf16.mxu0 %vm524_vm0, %v523_v0  ;;  %434 = vmatprep.mubr.msk.bf16.mxu1 %vm524_vm0, %v523_v0  ;;  %v55_v2 = vsel %vm53_vm1, %v48_v1, 0  ;;  %v481_v3 = vld [vmem:[%s674_s2] sm:$0x3f]   ;;  %v485_v12 = vld [vmem:[%s676_s4 + $0x18] sm:$0xff]   ;;  %v487_v14 = vld [vmem:[%s676_s4 + $0x28] sm:$0xff]   ;;  %vm375_vm5 = vcmask 11264  }
  0x14   :  { %v41_v4 = vld [vmem:[%s673_s1] sm:$0xf]  ;;  %427 = vmatpush3.bf16.msra.mxu0 %v55_v2  ;;  %v108_v8 = vsel %vm106_vm2, %v481_v3, 0  ;;  %v488_v15 = vld [vmem:[%s676_s4 + $0x30] sm:$0xff]   ;;  %v489_v16 = vld [vmem:[%s676_s4 + $0x38] sm:$0xff]  }
  0x15   :  { %v482_v5 = vld [vmem:[%s676_s4] sm:$0xff]   ;;  %v42_v6 = vpack.c.bf16 %v41_v4, %v41_v4  ;;  %438 = vmatprep.subr.bf16.mxu0 %v523_v0  ;;  %433 = vmatpush3.bf16.msra.mxu1 %v108_v8  ;;  %v491_v18 = vld [vmem:[%s677_s5 + $0x8] sm:$0xff]   ;;  %v492_v19 = vld [vmem:[%s677_s5 + $0x10] sm:$0xff]  }
  0x16   :  { %v39_v7 = vld [vmem:[%s672_s0] sm:$0xf]  ;;  %458 = vmatprep.subr.bf16.mxu1 %v523_v0  ;;  %v493_v20 = vld [vmem:[%s677_s5 + $0x18] sm:$0xff]   ;;  %v495_v22 = vld [vmem:[%s677_s5 + $0x28] sm:$0xff]  }
  0x17   :  { %v40_v9 = vpack.c.bf16 %v39_v7, %v39_v7  ;;  %429 = vmatmul.mubr.msk.bf16.vlgmr.msra.gmra.mrb[0].mxu0 %vm49_vm3, %v42_v6  ;;  %v486_v13 = vld [vmem:[%s676_s4 + $0x20] sm:$0xff]   ;;  %v496_v36 = vld [vmem:[%s677_s5 + $0x30] sm:$0xff]   ;;  %v497_v37 = vld [vmem:[%s677_s5 + $0x38] sm:$0xff]  }
  0x18   :  { %439 = vmatpush3.bf16.msra.mxu0 %v482_v5  ;;  %454 = vmatprep.mubr.msk.bf16.mxu0 %vm524_vm0, %v523_v0  ;;  %v490_v17 = vld [vmem:[%s677_s5] sm:$0xff]  }
  0x19   :  { %435 = vmatmul.mubr.msk.bf16.vlgmr.msra.gmra.mrb[0].mxu1 %vm102_vm4, %v40_v9  ;;  %440 = vmatprep.subr.bf16.mxu0 %v523_v0  ;;  %v494_v21 = vld [vmem:[%s677_s5 + $0x20] sm:$0xff]  }
  0x1a   :  { %474 = vmatprep.mubr.msk.bf16.mxu1 %vm524_vm0, %v523_v0  ;;  %459 = vmatpush3.bf16.msra.mxu1 %v490_v17  ;;  %v385_v26 = vld [vmem:[%s678_s6] ss:$0 sm:$0xff]  ;;  %v386_v38 = vld [vmem:[%s678_s6 + $0x1] ss:$0 sm:$0xff]  ;;  %v395_v46 = vld [vmem:[%s678_s6 + $0x2] ss:$0 sm:$0xff] }
  0x1b   :  { %460 = vmatprep.subr.bf16.mxu1 %v523_v0 }
  0x1c   :  { %441 = vmatpush3.bf16.msra.mxu0 %v483_v10 }
  0x1d   :  { %442 = vmatprep.subr.bf16.mxu0 %v523_v0 }
  0x1e   :  { %461 = vmatpush3.bf16.msra.mxu1 %v491_v18 }
  0x1f   :  { %462 = vmatprep.subr.bf16.mxu1 %v523_v0 }
  0x20   :  { %443 = vmatpush3.bf16.msra.mxu0 %v484_v11 }
  0x21   :  { %444 = vmatprep.subr.bf16.mxu0 %v523_v0 }
  0x22   :  { %463 = vmatpush3.bf16.msra.mxu1 %v492_v19 }
  0x23   :  { %464 = vmatprep.subr.bf16.mxu1 %v523_v0 }
  0x24   :  { %445 = vmatpush3.bf16.msra.mxu0 %v485_v12 }
  0x25   :  { %446 = vmatprep.subr.bf16.mxu0 %v523_v0 }
  0x26   :  { %465 = vmatpush3.bf16.msra.mxu1 %v493_v20 }
  0x27   :  { %466 = vmatprep.subr.bf16.mxu1 %v523_v0 }
  0x28   :  { %447 = vmatpush3.bf16.msra.mxu0 %v486_v13 }
  0x29   :  { %448 = vmatprep.subr.bf16.mxu0 %v523_v0 }
  0x2a   :  { %467 = vmatpush3.bf16.msra.mxu1 %v494_v21 }
  0x2b   :  { %468 = vmatprep.subr.bf16.mxu1 %v523_v0 }
  0x2c   :  { %449 = vmatpush3.bf16.msra.mxu0 %v487_v14 }
  0x2d   :  { %450 = vmatprep.subr.bf16.mxu0 %v523_v0 }
  0x2e   :  { %469 = vmatpush3.bf16.msra.mxu1 %v495_v22 }
  0x2f   :  { %470 = vmatprep.subr.bf16.mxu1 %v523_v0 }
  0x30   :  { %451 = vmatpush3.bf16.msra.mxu0 %v488_v15 }
  0x31   :  { %452 = vmatprep.subr.bf16.mxu0 %v523_v0 }
  0x32   :  { %471 = vmatpush3.bf16.msra.mxu1 %v496_v36 }
  0x33   :  { %472 = vmatprep.subr.bf16.mxu1 %v523_v0 }
  0x34   :  { %453 = vmatpush3.bf16.msra.mxu0 %v489_v16 }
  0x36   :  { %473 = vmatpush3.bf16.msra.mxu1 %v497_v37 }
  0xea   :  { %v91_v23 = vpop.f32.mrb[0].mxu0 }
  0xeb   :  { %v430_v24 = vpop.f32.mrb[1].mxu0 }
  0xec   :  { %v94_v25 = vpop.f32.mrb[2].mxu0  ;;  %v144_v27 = vpop.f32.mrb[0].mxu1 }
  0xed   :  { %v145_v28 = vadd.f32 %v144_v27, %v91_v23  ;;  %v431_v29 = vpop.f32.mrb[3].mxu0  ;;  %v436_v30 = vpop.f32.mrb[1].mxu1 }
  0xee   :  { %v147_v31 = vpop.f32.mrb[2].mxu1 }
  0xef   :  { %v154_v32 = vadd.f32 %v385_v26, %v145_v28  ;;  %v437_v33 = vpop.f32.mrb[3].mxu1 }
  0xf1   :  { %v155_v34 = vmax.f32 %v154_v32, 0.0 }
  0xf3   :  { %v156_v35 = vpack.c.bf16 %v155_v34, %v155_v34 }
  0xf5   :  { %455 = vmatmul.mubr.bf16.vlgmr.msra.gmra.mrb[4].mxu0 %v156_v35 }
 0x1c8   :  { %v259_v39 = vpop.f32.mrb[4].mxu0 }
 0x1c9   :  { %v260_v40 = vadd.f32 %v386_v38, %v259_v39  ;;  %v456_v41 = vpop.f32.mrb[5].mxu0 }
 0x1ca   :  { %v262_v42 = vpop.f32.mrb[6].mxu0 }
 0x1cb   :  { %v265_v43 = vmax.f32 %v260_v40, 0.0  ;;  %v457_v44 = vpop.f32.mrb[7].mxu0 }
 0x1cd   :  { %v266_v45 = vpack.c.bf16 %v265_v43, %v265_v43 }
 0x1cf   :  { %475 = vmatmul.mubr.bf16.vlgmr.msra.gmra.mrb[4].mxu1 %v266_v45 }
 0x2a2   :  { %v369_v47 = vpop.f32.mrb[4].mxu1 }
 0x2a3   :  { %v370_v48 = vadd.f32 %v395_v46, %v369_v47  ;;  %v476_v49 = vpop.f32.mrb[5].mxu1 }
 0x2a4   :  { %v372_v50 = vpop.f32.mrb[6].mxu1 }
 0x2a5   :  { %376 = vst.msk [vmem:[%s679_s7] sm:$0xf] %vm375_vm5, %v370_v48  ;;  %v477_v51 = vpop.f32.mrb[7].mxu1 }
 0x2a6   :  { %381 = vsyncpa [#allocation3], 1 }

</bundles_post_ra>
